<compile_context>
chip_gen: v7x
topology: tpu7x:2x2x1
jax: 0.10.0
libtpu: 0.0.40
codegen_flags: <defaults>
</compile_context>

<pallas_src>
import functools

import jax
import jax.numpy as jnp
from jax import lax
from jax.experimental import pallas as pl
from jax.experimental.pallas import tpu as pltpu

_SUBLANES = 8
_LANES = 128
_TARGET_BLOCK_ROWS = 2048   # (2048,128) f32 = 1 MiB per input block
_NUM_SPLITS = 2             # one slice per TensorCore on v7x; harmless elsewhere


def _wmse_kernel(x_ref, y_ref, out_ref, acc_ref, *, n_elems, block_rows, acc_rows):
    p = pl.program_id(0)          # parallel split (dual-TC on v7x)
    k = pl.program_id(1)          # sequential reduction steps within the split
    steps = pl.num_programs(1)

    @pl.when(k == 0)
    def _():
        acc_ref[...] = jnp.zeros_like(acc_ref)

    x = x_ref[...].astype(jnp.float32)
    y = y_ref[...].astype(jnp.float32)
    d = x - y
    sq = d * d

    block_elems = block_rows * _LANES
    logical_blk = p * steps + k
    start = logical_blk * block_elems
    # A block needs masking iff it reaches past the logical end of the data:
    # (a) the ragged last block (Pallas pads non-dividing blocks with garbage),
    # (b) blocks whose logical index is past the end (the index_map clamps them
    #     onto the last real block; their contribution must be zero).
    needs_mask = (start + block_elems) > n_elems

    @pl.when(jnp.logical_not(needs_mask))
    def _():
        # Fast path: interior block, no mask work. Fold the block's major dim
        # down to a vreg-shaped partial sum: pure VPU adds, no per-step XLU
        # cross-lane reduce / (1,1) chain.
        acc_ref[...] += jnp.sum(sq.reshape(-1, acc_rows, _LANES), axis=0)

    @pl.when(needs_mask)
    def _():
        # Rare path (at most one real block per split + any duplicated blocks).
        row = lax.broadcasted_iota(jnp.int32, (block_rows, _LANES), 0)
        col = lax.broadcasted_iota(jnp.int32, (block_rows, _LANES), 1)
        local_flat = row * _LANES + col
        rem = n_elems - start            # may be <= 0 for duplicated blocks
        masked = jnp.where(local_flat < rem, sq, 0.0)
        acc_ref[...] += jnp.sum(masked.reshape(-1, acc_rows, _LANES), axis=0)

    @pl.when(k == steps - 1)
    def _():
        out_ref[...] = acc_ref[...].reshape(out_ref.shape)


def criterion_with_weight(logits, labels, weight=1.0):
    """weight * MSE(logits.float32, labels.float32) (mean reduction) via Pallas."""
    assert logits.shape == labels.shape
    if weight is None:
        weight = 1.0
    n_elems = logits.size

    # Keep native dtypes in HBM; flattening a contiguous array is free.
    x = logits.reshape(-1)
    y = labels.reshape(-1)

    # Only pad (<=127 elements) when the flat size is not lane-aligned; the
    # common case is a zero-copy reshape to a lane-dense (rows, 128) view.
    lane_pad = (-n_elems) % _LANES
    if lane_pad:
        # TODO(synk): a dedicated ragged-tail path could avoid this copy too.
        x = jnp.pad(x, (0, lane_pad))
        y = jnp.pad(y, (0, lane_pad))

    rows = x.size // _LANES
    x2 = x.reshape(rows, _LANES)
    y2 = y.reshape(rows, _LANES)

    if rows <= _SUBLANES:
        block_rows = rows  # full-dim block for tiny inputs
    else:
        block_rows = min(_TARGET_BLOCK_ROWS, (rows // _SUBLANES) * _SUBLANES)
    acc_rows = min(block_rows, _SUBLANES)

    total_blocks = pl.cdiv(rows, block_rows)
    steps = pl.cdiv(total_blocks, _NUM_SPLITS)

    def in_index_map(p, k):
        # Never request a block starting past the array; duplicated (clamped)
        # blocks take the in-kernel masked path and contribute zero.
        return (jnp.minimum(p * steps + k, total_blocks - 1), 0)

    kernel = functools.partial(
        _wmse_kernel, n_elems=n_elems, block_rows=block_rows, acc_rows=acc_rows)

    partials = pl.pallas_call(
        kernel,
        out_shape=jax.ShapeDtypeStruct((_NUM_SPLITS, acc_rows, _LANES), jnp.float32),
        grid_spec=pltpu.PrefetchScalarGridSpec(
            num_scalar_prefetch=0,
            grid=(_NUM_SPLITS, steps),
            in_specs=[
                pl.BlockSpec((block_rows, _LANES), in_index_map),
                pl.BlockSpec((block_rows, _LANES), in_index_map),
            ],
            out_specs=pl.BlockSpec((1, acc_rows, _LANES), lambda p, k: (p, 0, 0)),
            scratch_shapes=[pltpu.VMEM((acc_rows, _LANES), jnp.float32)],
        ),
        compiler_params=pltpu.CompilerParams(
            dimension_semantics=("parallel", "arbitrary"),
        ),
    )(x2, y2)

    # Tiny finalization (one reduce over NUM_SPLITS*8*128 floats) plus the
    # mean/weight scaling stay in plain JAX, so `weight` may even be traced.
    return jnp.sum(partials) * (weight / n_elems)


if __name__ == "__main__":
    key = jax.random.PRNGKey(0)

    def ref_loss(lg, lb, w):
        return jnp.mean((lg.astype(jnp.float32) - lb.astype(jnp.float32)) ** 2) * w

    k1, k2, k3, k4, k5, k6 = jax.random.split(key, 6)

    # Main check: NCHW batch=2, channels=4, spatial 16x16 (f32).
    logits = jax.random.normal(k1, (2, 4, 16, 16), dtype=jnp.float32)
    labels = jax.random.normal(k2, (2, 4, 16, 16), dtype=jnp.float32)
    loss = jax.block_until_ready(criterion_with_weight(logits, labels, weight=0.5))
    assert jnp.allclose(loss, ref_loss(logits, labels, 0.5), rtol=1e-5, atol=1e-5), loss

    # Row count not a multiple of the block: exercises partial-block masking.
    lg2 = jax.random.normal(k3, (2, 3, 16, 16), dtype=jnp.float32)
    lb2 = jax.random.normal(k4, (2, 3, 16, 16), dtype=jnp.float32)
    l2 = jax.block_until_ready(criterion_with_weight(lg2, lb2, weight=1.0))
    assert jnp.allclose(l2, ref_loss(lg2, lb2, 1.0), rtol=1e-5, atol=1e-5), l2

    # Non-lane-aligned size + bf16 logits: exercises the pad fallback, the
    # in-kernel dtype cast (native dtype kept in HBM) and the masked tail path.
    lg3 = jax.random.normal(k5, (3, 5, 7), dtype=jnp.bfloat16)
    lb3 = jax.random.normal(k6, (3, 5, 7), dtype=jnp.float32)
    l3 = jax.block_until_ready(criterion_with_weight(lg3, lb3, weight=2.0))
    assert jnp.allclose(l3, ref_loss(lg3, lb3, 2.0), rtol=1e-5, atol=1e-5), l3

    # Larger slab so interior (mask-free fast path) blocks are exercised too.
    lg4 = jax.random.normal(k1, (4, 8, 64, 64), dtype=jnp.float32)
    lb4 = jax.random.normal(k2, (4, 8, 64, 64), dtype=jnp.float32)
    l4 = jax.block_until_ready(criterion_with_weight(lg4, lb4, weight=0.25))
    assert jnp.allclose(l4, ref_loss(lg4, lb4, 0.25), rtol=1e-5, atol=1e-5), l4

    print("KERNEL_OK")
</pallas_src>

<mosaic_0001>
module attributes {stable_mosaic.version = 11 : i64} {
  func.func @_wmse_kernel(%arg0: i32, %arg1: i32, %arg2: memref<16x128xf32, #tpu.memory_space<vmem>>, %arg3: memref<16x128xf32, #tpu.memory_space<vmem>>, %arg4: memref<1x8x128xf32, #tpu.memory_space<vmem>>, %arg5: memref<8x128xf32, #tpu.memory_space<vmem>>) attributes {dimension_semantics = [#tpu.dimension_semantics<parallel>, #tpu.dimension_semantics<arbitrary>], iteration_bounds = array<i64: 2, 1>, scalar_prefetch = 0 : i64, scratch_operands = 1 : i64, tpu.core_type = #tpu.core_type<tc>, window_params = [{transform_indices = @transform_0, window_bounds = array<i64: 16, 128>}, {transform_indices = @transform_1, window_bounds = array<i64: 16, 128>}, {transform_indices = @transform_2, window_bounds = array<i64: 1, 8, 128>}]} {
    %c0_i32 = arith.constant 0 : i32
    %0 = arith.cmpi eq, %arg1, %c0_i32 : i32
    %1 = arith.extui %0 : i1 to i32
    %c0_i32_0 = arith.constant 0 : i32
    %2 = arith.cmpi ne, %1, %c0_i32_0 : i32
    scf.if %2 {
      %cst = arith.constant 0.000000e+00 : f32
      %20 = vector.broadcast %cst : f32 to vector<8x128xf32>
      %c0_10 = arith.constant 0 : index
      %c0_11 = arith.constant 0 : index
      %21 = vector.load %arg5[%c0_10, %c0_11] : memref<8x128xf32, #tpu.memory_space<vmem>>, vector<8x128xf32>
      tpu.vector_store %arg5[%c0_10, %c0_11], %20 {strides = array<i32>} : memref<8x128xf32, #tpu.memory_space<vmem>>, vector<8x128xf32>,
    } else {
    }
    %c0 = arith.constant 0 : index
    %c0_1 = arith.constant 0 : index
    %3 = vector.load %arg2[%c0, %c0_1] : memref<16x128xf32, #tpu.memory_space<vmem>>, vector<16x128xf32>
    %c0_2 = arith.constant 0 : index
    %c0_3 = arith.constant 0 : index
    %4 = vector.load %arg3[%c0_2, %c0_3] : memref<16x128xf32, #tpu.memory_space<vmem>>, vector<16x128xf32>
    %5 = arith.subf %3, %4 : vector<16x128xf32>
    %6 = arith.mulf %5, %5 : vector<16x128xf32>
    %c1_i32 = arith.constant 1 : i32
    %7 = arith.muli %arg0, %c1_i32 : i32
    %8 = arith.addi %7, %arg1 : i32
    %c2048_i32 = arith.constant 2048 : i32
    %9 = arith.muli %8, %c2048_i32 : i32
    %c2048_i32_4 = arith.constant 2048 : i32
    %10 = arith.addi %9, %c2048_i32_4 : i32
    %c2048_i32_5 = arith.constant 2048 : i32
    %11 = arith.cmpi sgt, %10, %c2048_i32_5 : i32
    %true = arith.constant true
    %12 = arith.xori %11, %true : i1
    %13 = arith.extui %12 : i1 to i32
    %c0_i32_6 = arith.constant 0 : i32
    %14 = arith.cmpi ne, %13, %c0_i32_6 : i32
    scf.if %14 {
      %c0_10 = arith.constant 0 : index
      %c0_11 = arith.constant 0 : index
      %20 = vector.load %arg5[%c0_10, %c0_11] : memref<8x128xf32, #tpu.memory_space<vmem>>, vector<8x128xf32>
      %21 = vector.shape_cast %6 : vector<16x128xf32> to vector<2x8x128xf32>
      %cst = arith.constant dense<0.000000e+00> : vector<8x128xf32>
      %22 = vector.multi_reduction <add>, %21, %cst [0] : vector<2x8x128xf32> to vector<8x128xf32>
      %23 = arith.addf %20, %22 : vector<8x128xf32>
      %c0_12 = arith.constant 0 : index
      %c0_13 = arith.constant 0 : index
      %24 = vector.load %arg5[%c0_12, %c0_13] : memref<8x128xf32, #tpu.memory_space<vmem>>, vector<8x128xf32>
      tpu.vector_store %arg5[%c0_12, %c0_13], %23 {strides = array<i32>} : memref<8x128xf32, #tpu.memory_space<vmem>>, vector<8x128xf32>,
    } else {
    }
    %15 = arith.extui %11 : i1 to i32
    %c0_i32_7 = arith.constant 0 : i32
    %16 = arith.cmpi ne, %15, %c0_i32_7 : i32
    scf.if %16 {
      %20 = tpu.iota {dimensions = array<i32: 0>} : vector<16x128xi32>
      %21 = tpu.iota {dimensions = array<i32: 1>} : vector<16x128xi32>
      %c128_i32 = arith.constant 128 : i32
      %22 = vector.broadcast %c128_i32 : i32 to vector<16x128xi32>
      %23 = arith.muli %20, %22 : vector<16x128xi32>
      %24 = arith.addi %23, %21 : vector<16x128xi32>
      %c2048_i32_10 = arith.constant 2048 : i32
      %25 = arith.subi %c2048_i32_10, %9 : i32
      %26 = vector.broadcast %25 : i32 to vector<16x128xi32>
      %27 = arith.cmpi slt, %24, %26 : vector<16x128xi32>
      %cst = arith.constant 0.000000e+00 : f32
      %28 = vector.broadcast %cst : f32 to vector<16x128xf32>
      %29 = arith.select %27, %6, %28 : vector<16x128xi1>, vector<16x128xf32>
      %c0_11 = arith.constant 0 : index
      %c0_12 = arith.constant 0 : index
      %30 = vector.load %arg5[%c0_11, %c0_12] : memref<8x128xf32, #tpu.memory_space<vmem>>, vector<8x128xf32>
      %31 = vector.shape_cast %29 : vector<16x128xf32> to vector<2x8x128xf32>
      %cst_13 = arith.constant dense<0.000000e+00> : vector<8x128xf32>
      %32 = vector.multi_reduction <add>, %31, %cst_13 [0] : vector<2x8x128xf32> to vector<8x128xf32>
      %33 = arith.addf %30, %32 : vector<8x128xf32>
      %c0_14 = arith.constant 0 : index
      %c0_15 = arith.constant 0 : index
      %34 = vector.load %arg5[%c0_14, %c0_15] : memref<8x128xf32, #tpu.memory_space<vmem>>, vector<8x128xf32>
      tpu.vector_store %arg5[%c0_14, %c0_15], %33 {strides = array<i32>} : memref<8x128xf32, #tpu.memory_space<vmem>>, vector<8x128xf32>,
    } else {
    }
    %c0_i32_8 = arith.constant 0 : i32
    %17 = arith.cmpi eq, %arg1, %c0_i32_8 : i32
    %18 = arith.extui %17 : i1 to i32
    %c0_i32_9 = arith.constant 0 : i32
    %19 = arith.cmpi ne, %18, %c0_i32_9 : i32
    scf.if %19 {
      %c0_10 = arith.constant 0 : index
      %c0_11 = arith.constant 0 : index
      %20 = vector.load %arg5[%c0_10, %c0_11] : memref<8x128xf32, #tpu.memory_space<vmem>>, vector<8x128xf32>
      %21 = vector.shape_cast %20 : vector<8x128xf32> to vector<1x8x128xf32>
      %c0_12 = arith.constant 0 : index
      %c0_13 = arith.constant 0 : index
      %c0_14 = arith.constant 0 : index
      %22 = vector.load %arg4[%c0_12, %c0_13, %c0_14] : memref<1x8x128xf32, #tpu.memory_space<vmem>>, vector<1x8x128xf32>
      tpu.vector_store %arg4[%c0_12, %c0_13, %c0_14], %21 {strides = array<i32>} : memref<1x8x128xf32, #tpu.memory_space<vmem>>, vector<1x8x128xf32>,
    } else {
    }
    return
  }
  func.func @transform_0(%arg0: i32, %arg1: i32) -> (i32, i32) {
    %c1_i32 = arith.constant 1 : i32
    %0 = arith.muli %arg0, %c1_i32 : i32
    %1 = arith.addi %0, %arg1 : i32
    %c0_i32 = arith.constant 0 : i32
    %2 = arith.minsi %1, %c0_i32 : i32
    %c0_i32_0 = arith.constant 0 : i32
    %c0_i32_1 = arith.constant 0 : i32
    return %2, %c0_i32_0 : i32, i32
  }
  func.func @transform_1(%arg0: i32, %arg1: i32) -> (i32, i32) {
    %c1_i32 = arith.constant 1 : i32
    %0 = arith.muli %arg0, %c1_i32 : i32
    %1 = arith.addi %0, %arg1 : i32
    %c0_i32 = arith.constant 0 : i32
    %2 = arith.minsi %1, %c0_i32 : i32
    %c0_i32_0 = arith.constant 0 : i32
    %c0_i32_1 = arith.constant 0 : i32
    return %2, %c0_i32_0 : i32, i32
  }
  func.func @transform_2(%arg0: i32, %arg1: i32) -> (i32, i32, i32) {
    %c0_i32 = arith.constant 0 : i32
    %c0_i32_0 = arith.constant 0 : i32
    %c0_i32_1 = arith.constant 0 : i32
    return %arg0, %c0_i32, %c0_i32_0 : i32, i32, i32
  }
}

</mosaic_0001>

<bundles_post_ra>
// kernel: tpu_custom_call.1
= control target key start
LH: loop header
LB: loop body
LE: loop exit
PB: predicated region body
PF: predicated region fallthrough
CT: control target
= control target key end

     0   :  { %7 = vsyncpa [#allocation4], 0  ;;  %s923_s0 = inlined_call_operand.hbm [shape: f32[16,128], index: 0, kind: input, shape index: {}]   ;;  %s924_s1 = inlined_call_operand.hbm [shape: f32[16,128], index: 1, kind: input, shape index: {}]   ;;  %s925_s2 = inlined_call_operand.hbm [shape: f32[2,8,128], index: 2, kind: output, shape index: {}]  }
   0x1   :  { %9 = vsyncpa [#allocation4 + $0x1], 0 }
   0x2   :  { %10 = vsyncpa [#allocation7], 0 }
   0x3   :  { %12 = vsyncpa [#allocation7 + $0x1], 0 }
   0x4   :  { %13 = vsyncpa [#allocation5], 0 }
   0x5   :  { %15 = vsyncpa [#allocation5 + $0x1], 0  ;;  %s714_s9 = smov 0   ;;  %s716_s10 = smov 0  }
   0x6   :  { %s718_s11 = smov 0   ;;  %s720_s12 = smov 0  }
   0x7   :  { %s722_s13 = smov 0   ;;  %s724_s14 = smov 0  }
   0x8   :  { %s726_s15 = smov 0   ;;  %s728_s16 = smov 0  }
   0x9 LB: > { %s407_s17 = sadd.s32 4294967295, %s691_s16   ;;  %s408_s18 = sadd.s32 4294967294, %s691_s16   ;;  %s691_s16 = sphi %s728_s16, %s21_s16   ;;  %s687_s15 = sphi %s726_s15, %s944_s15   ;;  %s683_s14 = sphi %s724_s14, %s943_s14   ;;  %s679_s13 = sphi %s722_s13, %s913_s13   ;;  %s675_s12 = sphi %s720_s12, %s942_s12   ;;  %s671_s11 = sphi %s718_s11, %s941_s11   ;;  %s667_s10 = sphi %s716_s10, %s940_s10   ;;  %s663_s9 = sphi %s714_s9, %s939_s9  }
   0xa   : > { %s33_s19 = sadd.s32 1, %s687_s15  ;;  %p660_p1 = scmp.ne.s32.totalorder %s679_s13, 0 }
   0xb   : > { %p35_p0 = scmp.ge.s32.totalorder %s33_s19, 2  ;;  %p54_p2 = scmp.eq.s32.totalorder %s691_s16, 0 }
   0xc   : > { %p59_p3 = scmp.ne.s32.totalorder %s679_s13, %s675_s12  ;;  %p60_p5 = scmp.eq.s32.totalorder %s407_s17, 0 }
   0xd   : > { %s946_s19 = smov (%p35_p0, %s33_s19), 0  ;;  %p760_p4 = por %p660_p1, %p54_p2 }
   0xe   : > { %p764_p6 = por %p60_p5, %p59_p3  ;;  %s101_s22 = ssub.s32 %s687_s15, %s946_s19 }
   0xf   : > { %p102_p7 = scmp.eq.s32.totalorder %s101_s22, 0  ;;  %s104_s23 = sadd.s32 1, %s671_s11 }
  0x10   : > { %s929_s21 = scalar_select %p764_p6, 1, 0 }
  0x11   : > { %s772_s24 = scalar_select %p102_p7, %s671_s11, %s104_s23  }
  0x12   : > { %p114_p8 = scmp.ne.s32.totalorder %s671_s11, %s667_s10  ;;  %p115_p9 = scmp.eq.s32.totalorder %s407_s17, 1 }
  0x13   : > { %p120_p10 = scmp.ne.s32.totalorder %s667_s10, %s663_s9  ;;  %p121_p11 = scmp.eq.s32.totalorder %s408_s18, 1 }
  0x14   : > { %p778_p12 = por %p115_p9, %p114_p8  ;;  %p447_p1 = scmp.lt.s32.totalorder %s691_s16, 2 }
  0x15   : > { %p783_p0 = por %p121_p11, %p120_p10  ;;  %s693_s27 = smov [#allocation3]  }
  0x16   : > { %s930_s25 = scalar_select %p778_p12, 1, 0 }
  0x17   : > { %s931_s26 = scalar_select %p783_p0, 1, 0 }
  0x18   : > { %s155_s28 = sshll.u32 %s693_s27, 4  ;;  %p790_p2 = pnand %p447_p1, %p760_p4  ;;  %s156_s28 = int_to_ptr.vmem [resolvable:$true] %s155_s28 }
  0x19   : > { %s524_s4 = scalar_lea.hbm %s923_s0, 256 }
  0x1a   : > { %p525_p3 = scmp.ne.s32.totalorder %s923_s0, %s524_s4  ;;  %p526_p5 = pneg %p790_p2 }
  0x1b   : > { %p531_p8 = scmp.lt.u32.totalorder %s524_s4, %s524_s4  ;;  %p533_p9 = scmp.lt.u32.totalorder %s524_s4, %s923_s0 }
  0x1c   : > { %p527_p7 = pnand %p526_p5, %p525_p3 }
  0x1d   : > { %p534_p10 = por %p533_p9, %p531_p8 }
  0x1e   : > { %p528_p4 = pneg %p527_p7 }
  0x20   : > { %p535_p11 = pnand %p534_p10, %p528_p4 }
  0x22   : > { %538 = shalt.err (!%p535_p11)
}
  0x23   : > { %s539_s12 = scalar_lea.vmem %s156_s28, 256  ;;  %s546_s17 = scalar_lea.vmem %s156_s28, 512 }
  0x24   : > { %p540_p1 = scmp.ne.s32.totalorder %s156_s28, %s539_s12  ;;  %p547_p12 = scmp.lt.s32.totalorder %s156_s28, %s156_s28 }
  0x25   : > { %p548_p6 = scmp.lt.s32.totalorder %s546_s17, %s539_s12 }
  0x26   : > { %p542_p13 = pnand %p540_p1, %p526_p5 }
  0x27   : > { %p549_p3 = por %p548_p6, %p547_p12 }
  0x28   : > { %p543_p0 = pneg %p542_p13 }
  0x2a   : > { %p550_p7 = pnand %p549_p3, %p543_p0 }
  0x2c   : > { %553 = shalt.err (!%p550_p7)
}
  0x2d   : > { %s694_s18 = smov 128   ;;  %s695_s20 = smov 8  }
  0x2e   : > { %439 = dma.hbm_to_vmem [thread:$0]  (!%p790_p2), %s923_s0, 256, %s156_s28, [#allocation4], %s694_s18, %s694_s18, %s695_s20  }
  0x2f   : > { %p417_p13 = scmp.ge.s32.totalorder %s691_s16, 1  ;;  %p187_p4 = scmp.lt.s32.totalorder %s691_s16, 3 }
  0x30   : > { %s696_s30 = smov [#allocation6]   ;;  %s554_s6 = scalar_lea.hbm %s924_s1, 256 }
  0x31   : > { %p821_p8 = pnand %p417_p13, %p187_p4  ;;  %s179_s3 = sshll.u32 %s696_s30, 4  ;;  %s180_s3 = int_to_ptr.vmem [resolvable:$true] %s179_s3 }
  0x32   : > { %p555_p6 = scmp.ne.s32.totalorder %s924_s1, %s554_s6  ;;  %p561_p9 = scmp.lt.u32.totalorder %s554_s6, %s554_s6 }
  0x33   : > { %s933_s27 = scalar_select %p821_p8, 1, 0 }
  0x34   : > { %p557_p12 = pnand %p555_p6, %p526_p5  ;;  %p563_p10 = scmp.lt.u32.totalorder %s554_s6, %s924_s1 }
  0x36   : > { %p558_p0 = pneg %p557_p12  ;;  %p564_p11 = por %p563_p10, %p561_p9 }
  0x38   : > { %p565_p1 = pnand %p564_p11, %p558_p0 }
  0x3a   : > { %568 = shalt.err (!%p565_p1)
}
  0x3b   : > { %s569_s17 = scalar_lea.vmem %s180_s3, 256  ;;  %s576_s22 = scalar_lea.vmem %s180_s3, 512 }
  0x3c   : > { %p570_p3 = scmp.ne.s32.totalorder %s180_s3, %s569_s17  ;;  %p577_p4 = scmp.lt.s32.totalorder %s180_s3, %s180_s3 }
  0x3d   : > { %p578_p8 = scmp.lt.s32.totalorder %s576_s22, %s569_s17 }
  0x3e   : > { %p572_p7 = pnand %p570_p3, %p526_p5 }
  0x3f   : > { %p579_p6 = por %p578_p8, %p577_p4 }
  0x40   : > { %p573_p13 = pneg %p572_p7 }
  0x42   : > { %p580_p12 = pnand %p579_p6, %p573_p13 }
  0x44   : > { %583 = shalt.err (!%p580_p12)
}
  0x45   : > { %442 = dma.hbm_to_vmem [thread:$0]  (!%p790_p2), %s924_s1, 256, %s180_s3, [#allocation7], %s694_s18, %s694_s18, %s695_s20  }
  0x46   : > { %p934_p0 = scmp.ne.s32.totalorder %s933_s27, 0 }
  0x47   : > { %s193_s4 = sand.u32 (!%p934_p0), 1, %s679_s13   ;;  %p935_p5 = scmp.ne.s32.totalorder (!%p934_p0), %s929_s21, 0 }
  0x48   : > { %191 = sbr.rel (%p934_p0) target bundleno = 137 (0x89), region = 28  ;;  %s418_s5 = sshll.u32 (!%p934_p0), %s193_s4, 4 }
  0x49   : > { %s194_s6 = scalar_lea.sflag (!%p934_p0), [#allocation4], %s193_s4  ;;  %s197_s7 = scalar_lea.vmem (!%p934_p0), [#allocation3], %s418_s5 }
  0x4f   : > { %649 = dma.done.wait (%p935_p5), %s194_s6, 256  }
  0x50   : > { %651 = vsyncadd (%p935_p5), %s194_s6, 4294967040  ;;  %s203_s29 = scalar_lea.sflag [#allocation7], %s193_s4  ;;  %s206_s8 = scalar_lea.vmem [#allocation6], %s418_s5 }
  0x51   : > { %653 = dma.done.wait (%p935_p5), %s203_s29, 256  }
  0x52   : > { %655 = vsyncadd (%p935_p5), %s203_s29, 4294967040  ;;  %s229_s18 = sand.u32 1, %s667_s10   ;;  %s421_s20 = sshll.u32 %s683_s14, 11  ;;  %v697_v0 = vmov 0.0   ;;  %v245_v1 = vld [vmem:[%s197_s7] sm:$0xff]  ;;  %v246_v2 = vld [vmem:[%s197_s7 + $0x8] sm:$0xff] }
  0x53   : > { %s863_s27 = sshll.u32 %s229_s18, 3  ;;  %244 = vst [vmem:[#allocation2] sm:$0xff] %v697_v0  ;;  %s255_s3 = sadd.s32 2048, %s421_s20  ;;  %v247_v3 = vld [vmem:[%s206_s8] sm:$0xff]  ;;  %v248_v4 = vld [vmem:[%s206_s8 + $0x8] sm:$0xff] }
  0x54   : > { %v249_v5 = vsub.f32 %v245_v1, %v247_v3  ;;  %v250_v6 = vsub.f32 %v246_v2, %v248_v4  ;;  %s231_s21 = scalar_lea.vmem [#allocation8], %s863_s27  ;;  %p422_p2 = scmp.gt.s32.totalorder %s255_s3, 2048 }
  0x56   : > { %v251_v7 = vmul.f32 %v249_v5, %v249_v5  ;;  %v252_v8 = vmul.f32 %v250_v6, %v250_v6  ;;  %260 = sbr.rel (%p422_p2) target bundleno = 94 (0x5e), region = 44 }
  0x58   : > { %v262_v10 = vadd.f32 (!%p422_p2), %v252_v8, %v251_v7 }
  0x5a   : > { %v261_v9 = vld [vmem:[#allocation2] sm:$0xff] (!%p422_p2) }
  0x5b   : > { %v263_v11 = vadd.f32 (!%p422_p2), %v262_v10, %v261_v9 }
  0x5d   : > { %264 = vst [vmem:[#allocation2] sm:$0xff] %v263_v11 }
  0x5e PF: > { %p423_p8 = scmp.le.s32.totalorder %s255_s3, 2048 }
  0x5f   : > { %v268_v12 = vlaneseq (!%p423_p8)  ;;  %s277_s28 = ssub.s32 (!%p423_p8), 2048, %s421_s20 }
  0x60   : > { %267 = sbr.rel (%p423_p8) target bundleno = 112 (0x70), region = 48  ;;  %v278_v17 = vstv (!%p423_p8), %s277_s28 }
  0x61   : > { %v269_v13 = vshrl.u32 (!%p423_p8), %v268_v12, 7  ;;  %v272_v14 = vand.u32 (!%p423_p8), 127, %v268_v12 }
  0x63   : > { %v270_v15 = vadd.s32 (!%p423_p8), 8, %v269_v13  ;;  %v273_v16 = vmul.u32 (!%p423_p8), 128, %v269_v13 }
  0x64   : > { %v283_v23 = vld [vmem:[#allocation2] sm:$0xff] (!%p423_p8) }
  0x65   : > { %v274_v18 = vmul.u32 (!%p423_p8), 128, %v270_v15  ;;  %v275_v19 = vadd.s32 (!%p423_p8), %v273_v16, %v272_v14 }
  0x67   : > { %v276_v20 = vadd.s32 %v274_v18, %v272_v14  ;;  %vm279_vm0 = vcmp.lt.s32.totalorder %v275_v19, %v278_v17 }
  0x68   : > { %v281_v21 = vsel %vm279_vm0, %v251_v7, 0.0 }
  0x69   : > { %vm280_vm1 = vcmp.lt.s32.totalorder %v276_v20, %v278_v17 }
  0x6a   : > { %v282_v22 = vsel %vm280_vm1, %v252_v8, 0.0 }
  0x6b   : > { %v284_v24 = vadd.f32 %v282_v22, %v281_v21 }
  0x6d   : > { %v285_v25 = vadd.f32 %v284_v24, %v283_v23 }
  0x6f   : > { %286 = vst [vmem:[#allocation2] sm:$0xff] %v285_v25 }
  0x70 PF: > { %s425_s12 = sshll.u32 %s683_s14, 7  ;;  %s306_s30 = sshll.u32 %s231_s21, 4  ;;  %s307_s30 = int_to_ptr.vmem [resolvable:$true] %s306_s30 }
  0x71   : > { %s872_s23 = scalar_lea.hbm %s925_s2, %s425_s12  ;;  %s293_s4 = scalar_lea.sflag [#allocation5], %s229_s18 }
  0x72   : > { %s584_s5 = scalar_lea.vmem %s307_s30, 128  ;;  %p936_p10 = scmp.ne.s32.totalorder %s930_s25, 0 }
  0x73   : > { %p585_p9 = scmp.ne.s32.totalorder %s307_s30, %s584_s5  ;;  %s698_s6 = smov [#allocation8]  }
  0x74   : > { %s588_s7 = sshll.u32 %s698_s6, 4  ;;  %s589_s7 = int_to_ptr.vmem [resolvable:$false] %s588_s7 }
  0x75   : > { %p586_p11 = pnand %p585_p9, %p936_p10  ;;  %s590_s14 = scalar_lea.vmem %s589_s7, 256 }
  0x76   : > { %v290_v26 = vld [vmem:[#allocation2] sm:$0xff]  ;;  %p591_p3 = scmp.lt.s32.totalorder %s307_s30, %s589_s7  ;;  %p592_p7 = scmp.lt.s32.totalorder %s590_s14, %s584_s5 }
  0x77   : > { %291 = vst [vmem:[%s231_s21] sm:$0xff] %v290_v26  ;;  %p587_p1 = pneg %p586_p11 }
  0x78   : > { %p593_p13 = por %p592_p7, %p591_p3 }
  0x7a   : > { %p594_p4 = pnand %p593_p13, %p587_p1 }
  0x7c   : > { %597 = shalt.err (!%p594_p4)
}
  0x7d   : > { %s598_s29 = scalar_lea.hbm %s872_s23, 128  ;;  %s602_s20 = scalar_lea.hbm %s925_s2, 256 }
  0x7e   : > { %p599_p6 = scmp.ne.s32.totalorder %s872_s23, %s598_s29  ;;  %p603_p5 = scmp.lt.u32.totalorder %s872_s23, %s925_s2 }
  0x7f   : > { %p604_p2 = scmp.lt.u32.totalorder %s602_s20, %s598_s29  ;;  %p606_p9 = scmp.lt.u32.totalorder %s598_s29, %s872_s23 }
  0x80   : > { %p600_p12 = pnand %p599_p6, %p936_p10 }
  0x81   : > { %p605_p8 = por %p604_p2, %p603_p5 }
  0x82   : > { %p601_p0 = pneg %p600_p12 }
  0x83   : > { %p607_p11 = por %p606_p9, %p605_p8 }
  0x85   : > { %p608_p1 = pnand %p607_p11, %p601_p0 }
  0x87   : > { %611 = shalt.err (!%p608_p1)
}
  0x88   : > { %434 = dma.vmem_to_hbm [thread:$0]  (%p936_p10), %s307_s30, 128, %s872_s23, %s293_s4  }
  0x89 PF: > { %s318_s21 = sand.u32 1, %s663_s9   ;;  %p937_p3 = scmp.ne.s32.totalorder %s931_s26, 0 }
  0x8a   : > { %p938_p7 = scmp.ge.s32.totalorder %s691_s16, 2  ;;  %s319_s28 = scalar_lea.sflag [#allocation5], %s318_s21 }
  0x8c   : > { %p444_p13 = pnand %p938_p7, %p937_p3 }
  0x8e   : > { %657 = dma.done.wait (!%p444_p13), %s319_s28, 128  }
  0x8f   : > { %659 = vsyncadd (!%p444_p13), %s319_s28, 4294967168  ;;  %s21_s16 = sadd.s32 1, %s691_s16   ;;  %s939_s9 = smov %s667_s10 }
  0x90   : > { %p18_p4 = scmp.ge.s32.totalorder %s21_s16, 4   ;;  %s940_s10 = smov %s671_s11 }
  0x91   : > { %s941_s11 = smov %s772_s24  ;;  %s942_s12 = smov %s679_s13 }
  0x92   : > { %s913_s13 = smov 0   ;;  %s943_s14 = smov %s687_s15 }
  0x93   : > { %s944_s15 = smov %s946_s19  ;;  %20 = sbr.rel (!%p18_p4) target bundleno = 9 (0x9), region = 102 }
  0x9a   :  { %324 = vsyncpa [#allocation4], 1 }
  0x9b   :  { %326 = vsyncpa [#allocation4 + $0x1], 1 }
  0x9c   :  { %327 = vsyncpa [#allocation7], 1 }
  0x9d   :  { %329 = vsyncpa [#allocation7 + $0x1], 1 }
  0x9e   :  { %330 = vsyncpa [#allocation5], 1 }
  0x9f   :  { %332 = vsyncpa [#allocation5 + $0x1], 1 }

</bundles_post_ra>
